<compile_context>
chip_gen: v5e
topology: v5e:2x2
jax: 0.10.0
libtpu: 0.0.40
codegen_flags: <defaults>
</compile_context>

<pallas_src>
import math

import numpy as np

import jax
import jax.numpy as jnp
from jax.experimental import pallas as pl
from jax.experimental.pallas import tpu as pltpu

# ------------------------- model hyperparameters ----------------------------
INPUT_SIZE = 4
HIDDEN_SIZE = 8     # matches `hidden_size = 8` in the reference script
NUM_LAYERS = 3      # matches `num_layers = 3` in the reference script
OUTPUT_SIZE = 4
BATCH = 2
SEQ_LEN = 8


# ------------------------------ Pallas kernel -------------------------------
def decay_lstm_kernel(x_ref, wext_ref, wfc_ref, bfc_ref, out_ref):
    """Wavefront LSTM.

    x_ref   : (TW, B, I+1)  time-major input, last column is constant 1.0,
              last NUM_LAYERS-1 time rows are zero padding (ramp-down).
    wext_ref: (3H+I+1, 12H) fused weights.  LHS rows = [h0|h1|h2|x|1];
              columns = gate blocks [i|f|o|g], each 3H wide (layers l0,l1,l2);
              i/f/o columns pre-scaled by 0.5 for the one-tanh sigmoid trick.
    wfc_ref : (H, O), bfc_ref: (1, O) final Linear.
    """
    TW, B, _ = x_ref.shape
    H = wfc_ref.shape[0]
    H3, H9 = 3 * H, 9 * H

    wext = wext_ref[...]                       # loop-invariant MXU RHS

    # Ramp-up masks (compile-time constants, only used at s=0 and s=1):
    # at s=0 only layer 0 may update its state, at s=1 only layers 0 and 1.
    # Ramp-down needs no masking: every read uses pre-update state, so
    # inactive-layer garbage at the tail is never consumed.
    mask_l0 = jnp.concatenate([jnp.ones((B, H), jnp.float32),
                               jnp.zeros((B, 2 * H), jnp.float32)], axis=1)
    mask_l01 = jnp.concatenate([jnp.ones((B, 2 * H), jnp.float32),
                                jnp.zeros((B, H), jnp.float32)], axis=1)

    h_all = jnp.zeros((B, H3), jnp.float32)    # [h0 | h1 | h2]
    c_all = jnp.zeros((B, H3), jnp.float32)    # [c0 | c1 | c2]

    for s in range(TW):                        # TW = T + NUM_LAYERS - 1 = 10
        # Single fused MXU call per wavefront step:
        #   3 recurrent matmuls + layer-0 input projection + all biases.
        lhs = jnp.concatenate([h_all, x_ref[s]], axis=1)        # (B, 3H+I+1)
        gates = jnp.dot(lhs, wext,
                        preferred_element_type=jnp.float32)     # (B, 12H)

        # One EUP push for all gate activations.  sigmoid(z) = 0.5*tanh(z/2)+0.5
        # (the /2 was folded into the i/f/o weight columns in the wrapper).
        t_all = jnp.tanh(gates)
        ifo = t_all[:, :H9] * 0.5 + 0.5
        i_all = ifo[:, 0:H3]
        f_all = ifo[:, H3:2 * H3]
        o_all = ifo[:, 2 * H3:3 * H3]
        g_all = t_all[:, H9:]

        c_new = f_all * c_all + i_all * g_all                   # lane-aligned
        h_new = o_all * jnp.tanh(c_new)

        if s == 0:                             # only layer 0 live yet
            h_all, c_all = h_new * mask_l0, c_new * mask_l0
        elif s == 1:                           # layers 0 and 1 live
            h_all, c_all = h_new * mask_l01, c_new * mask_l01
        else:                                  # all live; tail garbage unread
            h_all, c_all = h_new, c_new

    h_top = h_all[:, 2 * H:3 * H]              # layer-2 hidden at last timestep
    out_ref[...] = (jnp.dot(h_top, wfc_ref[...],
                            preferred_element_type=jnp.float32)
                    + bfc_ref[...]).astype(out_ref.dtype)


# ------------------------------ wrapper --------------------------------------
@jax.jit
def decay_lstm_forward(x, w_ext, wfc, bfc):
    B, T, I = x.shape
    TW = T + NUM_LAYERS - 1
    # Time-major slab, zero-padded ramp-down steps, trailing constant-1 column
    # (so the per-step matmul also produces the bias — no separate add).
    x_tm = jnp.transpose(x, (1, 0, 2))                                 # (T,B,I)
    x_tm = jnp.concatenate([x_tm, jnp.zeros((TW - T, B, I), x.dtype)], axis=0)
    x_aug = jnp.concatenate([x_tm, jnp.ones((TW, B, 1), x.dtype)], axis=-1)
    return pl.pallas_call(
        decay_lstm_kernel,
        out_shape=jax.ShapeDtypeStruct((B, OUTPUT_SIZE), jnp.float32),
        in_specs=[pl.BlockSpec(memory_space=pltpu.MemorySpace.VMEM)] * 4,
        out_specs=pl.BlockSpec(memory_space=pltpu.MemorySpace.VMEM),
    )(x_aug, w_ext, wfc, bfc)


# ------------------------- deterministic param init -------------------------
def init_params(key):
    """PyTorch-style U(-1/sqrt(H), 1/sqrt(H)) init.

    Returns:
      kernel_params: (w_ext (3H+I+1, 12H), wfc (H, O), bfc (1, O)) fused layout.
      torch_params:  original nn.LSTM / nn.Linear layout (for the reference).
    """
    H, I, L, O = HIDDEN_SIZE, INPUT_SIZE, NUM_LAYERS, OUTPUT_SIZE
    scale = 1.0 / math.sqrt(H)
    torch_layers = []
    for layer in range(L):
        in_l = I if layer == 0 else H
        key, k1, k2, k3, k4 = jax.random.split(key, 5)
        w_ih = jax.random.uniform(k1, (4 * H, in_l), jnp.float32, -scale, scale)
        w_hh = jax.random.uniform(k2, (4 * H, H), jnp.float32, -scale, scale)
        b_ih = jax.random.uniform(k3, (4 * H,), jnp.float32, -scale, scale)
        b_hh = jax.random.uniform(k4, (4 * H,), jnp.float32, -scale, scale)
        torch_layers.append((w_ih, w_hh, b_ih, b_hh))
    key, k1, k2 = jax.random.split(key, 3)
    w_fc = jax.random.uniform(k1, (O, H), jnp.float32, -scale, scale)
    b_fc = jax.random.uniform(k2, (O,), jnp.float32, -scale, scale)

    # ---- pack the fused wavefront weight matrix (once, on the host) ----
    # LHS row layout : [h0 (H) | h1 (H) | h2 (H) | x (I) | 1]
    # Column layout  : gate blocks [i | f | o | g], each 3H wide, layers l0,l1,l2.
    # PyTorch gate order along the 4H axis is [i, f, g, o].
    torch_gate = {"i": 0, "f": 1, "g": 2, "o": 3}
    gate_order = ("i", "f", "o", "g")
    K = 3 * H + I + 1
    w_ext = np.zeros((K, 12 * H), np.float32)
    for l, (w_ih, w_hh, b_ih, b_hh) in enumerate(torch_layers):
        w_ih_np = np.asarray(w_ih)
        w_hh_np = np.asarray(w_hh)
        b_np = np.asarray(b_ih) + np.asarray(b_hh)
        # layer l's input rows: x rows for layer 0, h_{l-1} rows otherwise
        in_rows = slice(3 * H, 3 * H + I) if l == 0 else slice((l - 1) * H, l * H)
        for gpos, gname in enumerate(gate_order):
            tg = torch_gate[gname]
            cols = slice(gpos * 3 * H + l * H, gpos * 3 * H + (l + 1) * H)
            w_ext[l * H:(l + 1) * H, cols] = w_hh_np[tg * H:(tg + 1) * H, :].T
            w_ext[in_rows, cols] = w_ih_np[tg * H:(tg + 1) * H, :].T
            w_ext[K - 1, cols] = b_np[tg * H:(tg + 1) * H]
    # Pre-scale the sigmoid-gate (i/f/o = first 9H) columns by 0.5 so a single
    # in-kernel tanh covers all gates: sigmoid(z) = 0.5*tanh(z/2) + 0.5.
    w_ext[:, :9 * H] *= 0.5

    kernel_params = (jnp.asarray(w_ext),
                     jnp.asarray(np.asarray(w_fc).T),            # (H, O)
                     jnp.asarray(np.asarray(b_fc).reshape(1, O)))
    return kernel_params, (torch_layers, (w_fc, b_fc))


# ------------------------- pure-JAX reference (PyTorch semantics) -----------
def reference_forward(x, torch_params):
    torch_layers, (w_fc, b_fc) = torch_params
    H = HIDDEN_SIZE
    layer_in = x
    for (w_ih, w_hh, b_ih, b_hh) in torch_layers:
        B, T, _ = layer_in.shape
        h = jnp.zeros((B, H), jnp.float32)
        c = jnp.zeros((B, H), jnp.float32)
        outs = []
        for t in range(T):
            x_t = layer_in[:, t, :]
            gates = x_t @ w_ih.T + h @ w_hh.T + b_ih + b_hh   # PyTorch order i,f,g,o
            i_g = jax.nn.sigmoid(gates[:, 0 * H:1 * H])
            f_g = jax.nn.sigmoid(gates[:, 1 * H:2 * H])
            g_g = jnp.tanh(gates[:, 2 * H:3 * H])
            o_g = jax.nn.sigmoid(gates[:, 3 * H:4 * H])
            c = f_g * c + i_g * g_g
            h = o_g * jnp.tanh(c)
            outs.append(h)
        layer_in = jnp.stack(outs, axis=1)
    return layer_in[:, -1, :] @ w_fc.T + b_fc


# --------------------------------- main --------------------------------------
if __name__ == "__main__":
    key = jax.random.PRNGKey(0)
    key, xkey = jax.random.split(key)
    x = jax.random.normal(xkey, (BATCH, SEQ_LEN, INPUT_SIZE), jnp.float32)
    kernel_params, torch_params = init_params(key)

    out = decay_lstm_forward(x, *kernel_params)
    out = jax.block_until_ready(out)

    ref = reference_forward(x, torch_params)
    assert out.shape == (BATCH, OUTPUT_SIZE)
    assert jnp.allclose(out, ref, atol=5e-5, rtol=1e-4), (
        f"Pallas output mismatch vs reference:\n{out}\nvs\n{ref}")

    print("KERNEL_OK")
</pallas_src>

<mosaic_0001>
module attributes {stable_mosaic.version = 11 : i64} {
  func.func @decay_lstm_kernel(%arg0: memref<10x2x5xf32, #tpu.memory_space<vmem>>, %arg1: memref<29x96xf32, #tpu.memory_space<vmem>>, %arg2: memref<8x4xf32, #tpu.memory_space<vmem>>, %arg3: memref<1x4xf32, #tpu.memory_space<vmem>>, %arg4: memref<2x4xf32, #tpu.memory_space<vmem>>) attributes {dimension_semantics = [], scalar_prefetch = 0 : i64, scratch_operands = 0 : i64, tpu.core_type = #tpu.core_type<tc>} {
    %c0 = arith.constant 0 : index
    %c0_0 = arith.constant 0 : index
    %0 = vector.load %arg1[%c0, %c0_0] : memref<29x96xf32, #tpu.memory_space<vmem>>, vector<29x96xf32>
    %cst = arith.constant 1.000000e+00 : f32
    %1 = vector.broadcast %cst : f32 to vector<2x8xf32>
    %cst_1 = arith.constant 0.000000e+00 : f32
    %2 = vector.broadcast %cst_1 : f32 to vector<2x16xf32>
    %3 = tpu.concatenate %1, %2 in 1 : vector<2x8xf32>, vector<2x16xf32> -> vector<2x24xf32>
    %cst_2 = arith.constant 1.000000e+00 : f32
    %4 = vector.broadcast %cst_2 : f32 to vector<2x16xf32>
    %cst_3 = arith.constant 0.000000e+00 : f32
    %5 = vector.broadcast %cst_3 : f32 to vector<2x8xf32>
    %6 = tpu.concatenate %4, %5 in 1 : vector<2x16xf32>, vector<2x8xf32> -> vector<2x24xf32>
    %cst_4 = arith.constant 0.000000e+00 : f32
    %7 = vector.broadcast %cst_4 : f32 to vector<2x24xf32>
    %cst_5 = arith.constant 0.000000e+00 : f32
    %8 = vector.broadcast %cst_5 : f32 to vector<2x24xf32>
    %c0_6 = arith.constant 0 : index
    %c0_7 = arith.constant 0 : index
    %c0_8 = arith.constant 0 : index
    %9 = vector.load %arg0[%c0_6, %c0_7, %c0_8] : memref<10x2x5xf32, #tpu.memory_space<vmem>>, vector<1x2x5xf32>
    %10 = vector.shape_cast %9 : vector<1x2x5xf32> to vector<2x5xf32>
    %11 = tpu.concatenate %7, %10 in 1 : vector<2x24xf32>, vector<2x5xf32> -> vector<2x29xf32>
    %cst_9 = arith.constant dense<0.000000e+00> : vector<2x96xf32>
    %12 = tpu.matmul %11, %0, %cst_9 {dimension_numbers = #tpu.dot_dimension_numbers<[1], [0], [0], [1], [0, 0, 1, 1], [], []>} : vector<2x29xf32>, vector<29x96xf32>, vector<2x96xf32> -> vector<2x96xf32>
    %13 = math.tanh %12 : vector<2x96xf32>
    %14 = vector.extract_strided_slice %13 {offsets = [0, 0], sizes = [2, 72], strides = [1, 1]} : vector<2x96xf32> to vector<2x72xf32>
    %cst_10 = arith.constant 5.000000e-01 : f32
    %15 = vector.broadcast %cst_10 : f32 to vector<2x72xf32>
    %16 = arith.mulf %14, %15 : vector<2x72xf32>
    %cst_11 = arith.constant 5.000000e-01 : f32
    %17 = vector.broadcast %cst_11 : f32 to vector<2x72xf32>
    %18 = arith.addf %16, %17 : vector<2x72xf32>
    %19 = vector.extract_strided_slice %18 {offsets = [0, 0], sizes = [2, 24], strides = [1, 1]} : vector<2x72xf32> to vector<2x24xf32>
    %20 = vector.extract_strided_slice %18 {offsets = [0, 24], sizes = [2, 24], strides = [1, 1]} : vector<2x72xf32> to vector<2x24xf32>
    %21 = vector.extract_strided_slice %18 {offsets = [0, 48], sizes = [2, 24], strides = [1, 1]} : vector<2x72xf32> to vector<2x24xf32>
    %22 = vector.extract_strided_slice %13 {offsets = [0, 72], sizes = [2, 24], strides = [1, 1]} : vector<2x96xf32> to vector<2x24xf32>
    %23 = arith.mulf %20, %8 : vector<2x24xf32>
    %24 = arith.mulf %19, %22 : vector<2x24xf32>
    %25 = arith.addf %23, %24 : vector<2x24xf32>
    %26 = math.tanh %25 : vector<2x24xf32>
    %27 = arith.mulf %21, %26 : vector<2x24xf32>
    %28 = arith.mulf %27, %3 : vector<2x24xf32>
    %29 = arith.mulf %25, %3 : vector<2x24xf32>
    %c1 = arith.constant 1 : index
    %c0_12 = arith.constant 0 : index
    %c0_13 = arith.constant 0 : index
    %30 = vector.load %arg0[%c1, %c0_12, %c0_13] : memref<10x2x5xf32, #tpu.memory_space<vmem>>, vector<1x2x5xf32>
    %31 = vector.shape_cast %30 : vector<1x2x5xf32> to vector<2x5xf32>
    %32 = tpu.concatenate %28, %31 in 1 : vector<2x24xf32>, vector<2x5xf32> -> vector<2x29xf32>
    %cst_14 = arith.constant dense<0.000000e+00> : vector<2x96xf32>
    %33 = tpu.matmul %32, %0, %cst_14 {dimension_numbers = #tpu.dot_dimension_numbers<[1], [0], [0], [1], [0, 0, 1, 1], [], []>} : vector<2x29xf32>, vector<29x96xf32>, vector<2x96xf32> -> vector<2x96xf32>
    %34 = math.tanh %33 : vector<2x96xf32>
    %35 = vector.extract_strided_slice %34 {offsets = [0, 0], sizes = [2, 72], strides = [1, 1]} : vector<2x96xf32> to vector<2x72xf32>
    %cst_15 = arith.constant 5.000000e-01 : f32
    %36 = vector.broadcast %cst_15 : f32 to vector<2x72xf32>
    %37 = arith.mulf %35, %36 : vector<2x72xf32>
    %cst_16 = arith.constant 5.000000e-01 : f32
    %38 = vector.broadcast %cst_16 : f32 to vector<2x72xf32>
    %39 = arith.addf %37, %38 : vector<2x72xf32>
    %40 = vector.extract_strided_slice %39 {offsets = [0, 0], sizes = [2, 24], strides = [1, 1]} : vector<2x72xf32> to vector<2x24xf32>
    %41 = vector.extract_strided_slice %39 {offsets = [0, 24], sizes = [2, 24], strides = [1, 1]} : vector<2x72xf32> to vector<2x24xf32>
    %42 = vector.extract_strided_slice %39 {offsets = [0, 48], sizes = [2, 24], strides = [1, 1]} : vector<2x72xf32> to vector<2x24xf32>
    %43 = vector.extract_strided_slice %34 {offsets = [0, 72], sizes = [2, 24], strides = [1, 1]} : vector<2x96xf32> to vector<2x24xf32>
    %44 = arith.mulf %41, %29 : vector<2x24xf32>
    %45 = arith.mulf %40, %43 : vector<2x24xf32>
    %46 = arith.addf %44, %45 : vector<2x24xf32>
    %47 = math.tanh %46 : vector<2x24xf32>
    %48 = arith.mulf %42, %47 : vector<2x24xf32>
    %49 = arith.mulf %48, %6 : vector<2x24xf32>
    %50 = arith.mulf %46, %6 : vector<2x24xf32>
    %c2 = arith.constant 2 : index
    %c0_17 = arith.constant 0 : index
    %c0_18 = arith.constant 0 : index
    %51 = vector.load %arg0[%c2, %c0_17, %c0_18] : memref<10x2x5xf32, #tpu.memory_space<vmem>>, vector<1x2x5xf32>
    %52 = vector.shape_cast %51 : vector<1x2x5xf32> to vector<2x5xf32>
    %53 = tpu.concatenate %49, %52 in 1 : vector<2x24xf32>, vector<2x5xf32> -> vector<2x29xf32>
    %cst_19 = arith.constant dense<0.000000e+00> : vector<2x96xf32>
    %54 = tpu.matmul %53, %0, %cst_19 {dimension_numbers = #tpu.dot_dimension_numbers<[1], [0], [0], [1], [0, 0, 1, 1], [], []>} : vector<2x29xf32>, vector<29x96xf32>, vector<2x96xf32> -> vector<2x96xf32>
    %55 = math.tanh %54 : vector<2x96xf32>
    %56 = vector.extract_strided_slice %55 {offsets = [0, 0], sizes = [2, 72], strides = [1, 1]} : vector<2x96xf32> to vector<2x72xf32>
    %cst_20 = arith.constant 5.000000e-01 : f32
    %57 = vector.broadcast %cst_20 : f32 to vector<2x72xf32>
    %58 = arith.mulf %56, %57 : vector<2x72xf32>
    %cst_21 = arith.constant 5.000000e-01 : f32
    %59 = vector.broadcast %cst_21 : f32 to vector<2x72xf32>
    %60 = arith.addf %58, %59 : vector<2x72xf32>
    %61 = vector.extract_strided_slice %60 {offsets = [0, 0], sizes = [2, 24], strides = [1, 1]} : vector<2x72xf32> to vector<2x24xf32>
    %62 = vector.extract_strided_slice %60 {offsets = [0, 24], sizes = [2, 24], strides = [1, 1]} : vector<2x72xf32> to vector<2x24xf32>
    %63 = vector.extract_strided_slice %60 {offsets = [0, 48], sizes = [2, 24], strides = [1, 1]} : vector<2x72xf32> to vector<2x24xf32>
    %64 = vector.extract_strided_slice %55 {offsets = [0, 72], sizes = [2, 24], strides = [1, 1]} : vector<2x96xf32> to vector<2x24xf32>
    %65 = arith.mulf %62, %50 : vector<2x24xf32>
    %66 = arith.mulf %61, %64 : vector<2x24xf32>
    %67 = arith.addf %65, %66 : vector<2x24xf32>
    %68 = math.tanh %67 : vector<2x24xf32>
    %69 = arith.mulf %63, %68 : vector<2x24xf32>
    %c3 = arith.constant 3 : index
    %c0_22 = arith.constant 0 : index
    %c0_23 = arith.constant 0 : index
    %70 = vector.load %arg0[%c3, %c0_22, %c0_23] : memref<10x2x5xf32, #tpu.memory_space<vmem>>, vector<1x2x5xf32>
    %71 = vector.shape_cast %70 : vector<1x2x5xf32> to vector<2x5xf32>
    %72 = tpu.concatenate %69, %71 in 1 : vector<2x24xf32>, vector<2x5xf32> -> vector<2x29xf32>
    %cst_24 = arith.constant dense<0.000000e+00> : vector<2x96xf32>
    %73 = tpu.matmul %72, %0, %cst_24 {dimension_numbers = #tpu.dot_dimension_numbers<[1], [0], [0], [1], [0, 0, 1, 1], [], []>} : vector<2x29xf32>, vector<29x96xf32>, vector<2x96xf32> -> vector<2x96xf32>
    %74 = math.tanh %73 : vector<2x96xf32>
    %75 = vector.extract_strided_slice %74 {offsets = [0, 0], sizes = [2, 72], strides = [1, 1]} : vector<2x96xf32> to vector<2x72xf32>
    %cst_25 = arith.constant 5.000000e-01 : f32
    %76 = vector.broadcast %cst_25 : f32 to vector<2x72xf32>
    %77 = arith.mulf %75, %76 : vector<2x72xf32>
    %cst_26 = arith.constant 5.000000e-01 : f32
    %78 = vector.broadcast %cst_26 : f32 to vector<2x72xf32>
    %79 = arith.addf %77, %78 : vector<2x72xf32>
    %80 = vector.extract_strided_slice %79 {offsets = [0, 0], sizes = [2, 24], strides = [1, 1]} : vector<2x72xf32> to vector<2x24xf32>
    %81 = vector.extract_strided_slice %79 {offsets = [0, 24], sizes = [2, 24], strides = [1, 1]} : vector<2x72xf32> to vector<2x24xf32>
    %82 = vector.extract_strided_slice %79 {offsets = [0, 48], sizes = [2, 24], strides = [1, 1]} : vector<2x72xf32> to vector<2x24xf32>
    %83 = vector.extract_strided_slice %74 {offsets = [0, 72], sizes = [2, 24], strides = [1, 1]} : vector<2x96xf32> to vector<2x24xf32>
    %84 = arith.mulf %81, %67 : vector<2x24xf32>
    %85 = arith.mulf %80, %83 : vector<2x24xf32>
    %86 = arith.addf %84, %85 : vector<2x24xf32>
    %87 = math.tanh %86 : vector<2x24xf32>
    %88 = arith.mulf %82, %87 : vector<2x24xf32>
    %c4 = arith.constant 4 : index
    %c0_27 = arith.constant 0 : index
    %c0_28 = arith.constant 0 : index
    %89 = vector.load %arg0[%c4, %c0_27, %c0_28] : memref<10x2x5xf32, #tpu.memory_space<vmem>>, vector<1x2x5xf32>
    %90 = vector.shape_cast %89 : vector<1x2x5xf32> to vector<2x5xf32>
    %91 = tpu.concatenate %88, %90 in 1 : vector<2x24xf32>, vector<2x5xf32> -> vector<2x29xf32>
    %cst_29 = arith.constant dense<0.000000e+00> : vector<2x96xf32>
    %92 = tpu.matmul %91, %0, %cst_29 {dimension_numbers = #tpu.dot_dimension_numbers<[1], [0], [0], [1], [0, 0, 1, 1], [], []>} : vector<2x29xf32>, vector<29x96xf32>, vector<2x96xf32> -> vector<2x96xf32>
    %93 = math.tanh %92 : vector<2x96xf32>
    %94 = vector.extract_strided_slice %93 {offsets = [0, 0], sizes = [2, 72], strides = [1, 1]} : vector<2x96xf32> to vector<2x72xf32>
    %cst_30 = arith.constant 5.000000e-01 : f32
    %95 = vector.broadcast %cst_30 : f32 to vector<2x72xf32>
    %96 = arith.mulf %94, %95 : vector<2x72xf32>
    %cst_31 = arith.constant 5.000000e-01 : f32
    %97 = vector.broadcast %cst_31 : f32 to vector<2x72xf32>
    %98 = arith.addf %96, %97 : vector<2x72xf32>
    %99 = vector.extract_strided_slice %98 {offsets = [0, 0], sizes = [2, 24], strides = [1, 1]} : vector<2x72xf32> to vector<2x24xf32>
    %100 = vector.extract_strided_slice %98 {offsets = [0, 24], sizes = [2, 24], strides = [1, 1]} : vector<2x72xf32> to vector<2x24xf32>
    %101 = vector.extract_strided_slice %98 {offsets = [0, 48], sizes = [2, 24], strides = [1, 1]} : vector<2x72xf32> to vector<2x24xf32>
    %102 = vector.extract_strided_slice %93 {offsets = [0, 72], sizes = [2, 24], strides = [1, 1]} : vector<2x96xf32> to vector<2x24xf32>
    %103 = arith.mulf %100, %86 : vector<2x24xf32>
    %104 = arith.mulf %99, %102 : vector<2x24xf32>
    %105 = arith.addf %103, %104 : vector<2x24xf32>
    %106 = math.tanh %105 : vector<2x24xf32>
    %107 = arith.mulf %101, %106 : vector<2x24xf32>
    %c5 = arith.constant 5 : index
    %c0_32 = arith.constant 0 : index
    %c0_33 = arith.constant 0 : index
    %108 = vector.load %arg0[%c5, %c0_32, %c0_33] : memref<10x2x5xf32, #tpu.memory_space<vmem>>, vector<1x2x5xf32>
    %109 = vector.shape_cast %108 : vector<1x2x5xf32> to vector<2x5xf32>
    %110 = tpu.concatenate %107, %109 in 1 : vector<2x24xf32>, vector<2x5xf32> -> vector<2x29xf32>
    %cst_34 = arith.constant dense<0.000000e+00> : vector<2x96xf32>
    %111 = tpu.matmul %110, %0, %cst_34 {dimension_numbers = #tpu.dot_dimension_numbers<[1], [0], [0], [1], [0, 0, 1, 1], [], []>} : vector<2x29xf32>, vector<29x96xf32>, vector<2x96xf32> -> vector<2x96xf32>
    %112 = math.tanh %111 : vector<2x96xf32>
    %113 = vector.extract_strided_slice %112 {offsets = [0, 0], sizes = [2, 72], strides = [1, 1]} : vector<2x96xf32> to vector<2x72xf32>
    %cst_35 = arith.constant 5.000000e-01 : f32
    %114 = vector.broadcast %cst_35 : f32 to vector<2x72xf32>
    %115 = arith.mulf %113, %114 : vector<2x72xf32>
    %cst_36 = arith.constant 5.000000e-01 : f32
    %116 = vector.broadcast %cst_36 : f32 to vector<2x72xf32>
    %117 = arith.addf %115, %116 : vector<2x72xf32>
    %118 = vector.extract_strided_slice %117 {offsets = [0, 0], sizes = [2, 24], strides = [1, 1]} : vector<2x72xf32> to vector<2x24xf32>
    %119 = vector.extract_strided_slice %117 {offsets = [0, 24], sizes = [2, 24], strides = [1, 1]} : vector<2x72xf32> to vector<2x24xf32>
    %120 = vector.extract_strided_slice %117 {offsets = [0, 48], sizes = [2, 24], strides = [1, 1]} : vector<2x72xf32> to vector<2x24xf32>
    %121 = vector.extract_strided_slice %112 {offsets = [0, 72], sizes = [2, 24], strides = [1, 1]} : vector<2x96xf32> to vector<2x24xf32>
    %122 = arith.mulf %119, %105 : vector<2x24xf32>
    %123 = arith.mulf %118, %121 : vector<2x24xf32>
    %124 = arith.addf %122, %123 : vector<2x24xf32>
    %125 = math.tanh %124 : vector<2x24xf32>
    %126 = arith.mulf %120, %125 : vector<2x24xf32>
    %c6 = arith.constant 6 : index
    %c0_37 = arith.constant 0 : index
    %c0_38 = arith.constant 0 : index
    %127 = vector.load %arg0[%c6, %c0_37, %c0_38] : memref<10x2x5xf32, #tpu.memory_space<vmem>>, vector<1x2x5xf32>
    %128 = vector.shape_cast %127 : vector<1x2x5xf32> to vector<2x5xf32>
    %129 = tpu.concatenate %126, %128 in 1 : vector<2x24xf32>, vector<2x5xf32> -> vector<2x29xf32>
    %cst_39 = arith.constant dense<0.000000e+00> : vector<2x96xf32>
    %130 = tpu.matmul %129, %0, %cst_39 {dimension_numbers = #tpu.dot_dimension_numbers<[1], [0], [0], [1], [0, 0, 1, 1], [], []>} : vector<2x29xf32>, vector<29x96xf32>, vector<2x96xf32> -> vector<2x96xf32>
    %131 = math.tanh %130 : vector<2x96xf32>
    %132 = vector.extract_strided_slice %131 {offsets = [0, 0], sizes = [2, 72], strides = [1, 1]} : vector<2x96xf32> to vector<2x72xf32>
    %cst_40 = arith.constant 5.000000e-01 : f32
    %133 = vector.broadcast %cst_40 : f32 to vector<2x72xf32>
    %134 = arith.mulf %132, %133 : vector<2x72xf32>
    %cst_41 = arith.constant 5.000000e-01 : f32
    %135 = vector.broadcast %cst_41 : f32 to vector<2x72xf32>
    %136 = arith.addf %134, %135 : vector<2x72xf32>
    %137 = vector.extract_strided_slice %136 {offsets = [0, 0], sizes = [2, 24], strides = [1, 1]} : vector<2x72xf32> to vector<2x24xf32>
    %138 = vector.extract_strided_slice %136 {offsets = [0, 24], sizes = [2, 24], strides = [1, 1]} : vector<2x72xf32> to vector<2x24xf32>
    %139 = vector.extract_strided_slice %136 {offsets = [0, 48], sizes = [2, 24], strides = [1, 1]} : vector<2x72xf32> to vector<2x24xf32>
    %140 = vector.extract_strided_slice %131 {offsets = [0, 72], sizes = [2, 24], strides = [1, 1]} : vector<2x96xf32> to vector<2x24xf32>
    %141 = arith.mulf %138, %124 : vector<2x24xf32>
    %142 = arith.mulf %137, %140 : vector<2x24xf32>
    %143 = arith.addf %141, %142 : vector<2x24xf32>
    %144 = math.tanh %143 : vector<2x24xf32>
    %145 = arith.mulf %139, %144 : vector<2x24xf32>
    %c7 = arith.constant 7 : index
    %c0_42 = arith.constant 0 : index
    %c0_43 = arith.constant 0 : index
    %146 = vector.load %arg0[%c7, %c0_42, %c0_43] : memref<10x2x5xf32, #tpu.memory_space<vmem>>, vector<1x2x5xf32>
    %147 = vector.shape_cast %146 : vector<1x2x5xf32> to vector<2x5xf32>
    %148 = tpu.concatenate %145, %147 in 1 : vector<2x24xf32>, vector<2x5xf32> -> vector<2x29xf32>
    %cst_44 = arith.constant dense<0.000000e+00> : vector<2x96xf32>
    %149 = tpu.matmul %148, %0, %cst_44 {dimension_numbers = #tpu.dot_dimension_numbers<[1], [0], [0], [1], [0, 0, 1, 1], [], []>} : vector<2x29xf32>, vector<29x96xf32>, vector<2x96xf32> -> vector<2x96xf32>
    %150 = math.tanh %149 : vector<2x96xf32>
    %151 = vector.extract_strided_slice %150 {offsets = [0, 0], sizes = [2, 72], strides = [1, 1]} : vector<2x96xf32> to vector<2x72xf32>
    %cst_45 = arith.constant 5.000000e-01 : f32
    %152 = vector.broadcast %cst_45 : f32 to vector<2x72xf32>
    %153 = arith.mulf %151, %152 : vector<2x72xf32>
    %cst_46 = arith.constant 5.000000e-01 : f32
    %154 = vector.broadcast %cst_46 : f32 to vector<2x72xf32>
    %155 = arith.addf %153, %154 : vector<2x72xf32>
    %156 = vector.extract_strided_slice %155 {offsets = [0, 0], sizes = [2, 24], strides = [1, 1]} : vector<2x72xf32> to vector<2x24xf32>
    %157 = vector.extract_strided_slice %155 {offsets = [0, 24], sizes = [2, 24], strides = [1, 1]} : vector<2x72xf32> to vector<2x24xf32>
    %158 = vector.extract_strided_slice %155 {offsets = [0, 48], sizes = [2, 24], strides = [1, 1]} : vector<2x72xf32> to vector<2x24xf32>
    %159 = vector.extract_strided_slice %150 {offsets = [0, 72], sizes = [2, 24], strides = [1, 1]} : vector<2x96xf32> to vector<2x24xf32>
    %160 = arith.mulf %157, %143 : vector<2x24xf32>
    %161 = arith.mulf %156, %159 : vector<2x24xf32>
    %162 = arith.addf %160, %161 : vector<2x24xf32>
    %163 = math.tanh %162 : vector<2x24xf32>
    %164 = arith.mulf %158, %163 : vector<2x24xf32>
    %c8 = arith.constant 8 : index
    %c0_47 = arith.constant 0 : index
    %c0_48 = arith.constant 0 : index
    %165 = vector.load %arg0[%c8, %c0_47, %c0_48] : memref<10x2x5xf32, #tpu.memory_space<vmem>>, vector<1x2x5xf32>
    %166 = vector.shape_cast %165 : vector<1x2x5xf32> to vector<2x5xf32>
    %167 = tpu.concatenate %164, %166 in 1 : vector<2x24xf32>, vector<2x5xf32> -> vector<2x29xf32>
    %cst_49 = arith.constant dense<0.000000e+00> : vector<2x96xf32>
    %168 = tpu.matmul %167, %0, %cst_49 {dimension_numbers = #tpu.dot_dimension_numbers<[1], [0], [0], [1], [0, 0, 1, 1], [], []>} : vector<2x29xf32>, vector<29x96xf32>, vector<2x96xf32> -> vector<2x96xf32>
    %169 = math.tanh %168 : vector<2x96xf32>
    %170 = vector.extract_strided_slice %169 {offsets = [0, 0], sizes = [2, 72], strides = [1, 1]} : vector<2x96xf32> to vector<2x72xf32>
    %cst_50 = arith.constant 5.000000e-01 : f32
    %171 = vector.broadcast %cst_50 : f32 to vector<2x72xf32>
    %172 = arith.mulf %170, %171 : vector<2x72xf32>
    %cst_51 = arith.constant 5.000000e-01 : f32
    %173 = vector.broadcast %cst_51 : f32 to vector<2x72xf32>
    %174 = arith.addf %172, %173 : vector<2x72xf32>
    %175 = vector.extract_strided_slice %174 {offsets = [0, 0], sizes = [2, 24], strides = [1, 1]} : vector<2x72xf32> to vector<2x24xf32>
    %176 = vector.extract_strided_slice %174 {offsets = [0, 24], sizes = [2, 24], strides = [1, 1]} : vector<2x72xf32> to vector<2x24xf32>
    %177 = vector.extract_strided_slice %174 {offsets = [0, 48], sizes = [2, 24], strides = [1, 1]} : vector<2x72xf32> to vector<2x24xf32>
    %178 = vector.extract_strided_slice %169 {offsets = [0, 72], sizes = [2, 24], strides = [1, 1]} : vector<2x96xf32> to vector<2x24xf32>
    %179 = arith.mulf %176, %162 : vector<2x24xf32>
    %180 = arith.mulf %175, %178 : vector<2x24xf32>
    %181 = arith.addf %179, %180 : vector<2x24xf32>
    %182 = math.tanh %181 : vector<2x24xf32>
    %183 = arith.mulf %177, %182 : vector<2x24xf32>
    %c9 = arith.constant 9 : index
    %c0_52 = arith.constant 0 : index
    %c0_53 = arith.constant 0 : index
    %184 = vector.load %arg0[%c9, %c0_52, %c0_53] : memref<10x2x5xf32, #tpu.memory_space<vmem>>, vector<1x2x5xf32>
    %185 = vector.shape_cast %184 : vector<1x2x5xf32> to vector<2x5xf32>
    %186 = tpu.concatenate %183, %185 in 1 : vector<2x24xf32>, vector<2x5xf32> -> vector<2x29xf32>
    %cst_54 = arith.constant dense<0.000000e+00> : vector<2x96xf32>
    %187 = tpu.matmul %186, %0, %cst_54 {dimension_numbers = #tpu.dot_dimension_numbers<[1], [0], [0], [1], [0, 0, 1, 1], [], []>} : vector<2x29xf32>, vector<29x96xf32>, vector<2x96xf32> -> vector<2x96xf32>
    %188 = math.tanh %187 : vector<2x96xf32>
    %189 = vector.extract_strided_slice %188 {offsets = [0, 0], sizes = [2, 72], strides = [1, 1]} : vector<2x96xf32> to vector<2x72xf32>
    %cst_55 = arith.constant 5.000000e-01 : f32
    %190 = vector.broadcast %cst_55 : f32 to vector<2x72xf32>
    %191 = arith.mulf %189, %190 : vector<2x72xf32>
    %cst_56 = arith.constant 5.000000e-01 : f32
    %192 = vector.broadcast %cst_56 : f32 to vector<2x72xf32>
    %193 = arith.addf %191, %192 : vector<2x72xf32>
    %194 = vector.extract_strided_slice %193 {offsets = [0, 0], sizes = [2, 24], strides = [1, 1]} : vector<2x72xf32> to vector<2x24xf32>
    %195 = vector.extract_strided_slice %193 {offsets = [0, 24], sizes = [2, 24], strides = [1, 1]} : vector<2x72xf32> to vector<2x24xf32>
    %196 = vector.extract_strided_slice %193 {offsets = [0, 48], sizes = [2, 24], strides = [1, 1]} : vector<2x72xf32> to vector<2x24xf32>
    %197 = vector.extract_strided_slice %188 {offsets = [0, 72], sizes = [2, 24], strides = [1, 1]} : vector<2x96xf32> to vector<2x24xf32>
    %198 = arith.mulf %195, %181 : vector<2x24xf32>
    %199 = arith.mulf %194, %197 : vector<2x24xf32>
    %200 = arith.addf %198, %199 : vector<2x24xf32>
    %201 = math.tanh %200 : vector<2x24xf32>
    %202 = arith.mulf %196, %201 : vector<2x24xf32>
    %203 = vector.extract_strided_slice %202 {offsets = [0, 16], sizes = [2, 8], strides = [1, 1]} : vector<2x24xf32> to vector<2x8xf32>
    %c0_57 = arith.constant 0 : index
    %c0_58 = arith.constant 0 : index
    %204 = vector.load %arg2[%c0_57, %c0_58] : memref<8x4xf32, #tpu.memory_space<vmem>>, vector<8x4xf32>
    %cst_59 = arith.constant dense<0.000000e+00> : vector<2x4xf32>
    %205 = tpu.matmul %203, %204, %cst_59 {dimension_numbers = #tpu.dot_dimension_numbers<[1], [0], [0], [1], [0, 0, 1, 1], [], []>} : vector<2x8xf32>, vector<8x4xf32>, vector<2x4xf32> -> vector<2x4xf32>
    %c0_60 = arith.constant 0 : index
    %c0_61 = arith.constant 0 : index
    %206 = vector.load %arg3[%c0_60, %c0_61] : memref<1x4xf32, #tpu.memory_space<vmem>>, vector<1x4xf32>
    %207 = vector.broadcast %206 : vector<1x4xf32> to vector<2x4xf32>
    %208 = arith.addf %205, %207 : vector<2x4xf32>
    %c0_62 = arith.constant 0 : index
    %c0_63 = arith.constant 0 : index
    %209 = vector.load %arg4[%c0_62, %c0_63] : memref<2x4xf32, #tpu.memory_space<vmem>>, vector<2x4xf32>
    tpu.vector_store %arg4[%c0_62, %c0_63], %208 {strides = array<i32>} : memref<2x4xf32, #tpu.memory_space<vmem>>, vector<2x4xf32>,
    return
  }
}

</mosaic_0001>

<bundles_post_ra>
// kernel: decay_lstm_forward.1
= control target key start
LH: loop header
LB: loop body
LE: loop exit
PB: predicated region body
PF: predicated region fallthrough
CT: control target
= control target key end

     0   :  { %vm37_vm0 = vcmask 1044480   ;;  %s737_s19 = smov 24   ;;  %s953_s0 = inlined_call_operand.vmem [shape: f32[10,2,5], index: 0, kind: input, shape index: {}]   ;;  %s954_s1 = inlined_call_operand.vmem [shape: f32[29,96], index: 1, kind: input, shape index: {}]   ;;  %s955_s2 = inlined_call_operand.vmem [shape: f32[8,4], index: 2, kind: input, shape index: {}]   ;;  %s956_s3 = inlined_call_operand.vmem [shape: f32[1,4], index: 3, kind: input, shape index: {}]   ;;  %s957_s4 = inlined_call_operand.hbm [shape: f32[2,4], index: 4, kind: output, shape index: {}]  }
   0x1   :  { %v26_v0 = vld [vmem:[%s953_s0] sm:$0x3]  ;;  %v775_v1 = vld [vmem:[%s954_s1 + $0x18] sm:$0x1f]  ;;  %v783_v2 = vld [vmem:[%s954_s1 + $0x10] sm:$0xff] }
   0x2   :  { %28 = vrot.lane.b32.xlu0 %v26_v0, %s737_s19  ;;  %633 = vmatpush.msk.msra.mxu0 %vm37_vm0, %v775_v1  ;;  %v788_v3 = vld [vmem:[%s954_s1 + $0x8] sm:$0xff] }
   0x3   :  { %636 = vmatpush.msk.msra.mxu1 %vm37_vm0, %v775_v1  ;;  %639 = vmatpush.msk.msra.mxu2 %vm37_vm0, %v775_v1 }
   0x4   :  { %9 = vsyncpa [#allocation3], 0  ;;  %54 = vmatpush.msra.mxu0 %v783_v2  ;;  %642 = vmatpush.msk.msra.mxu3 %vm37_vm0, %v775_v1  ;;  %v807_v4 = vld [vmem:[%s954_s1] sm:$0xff]  ;;  %vm31_vm1 = vcmask 195584   ;;  %vm33_vm2 = vcmask 236544   ;;  %s738_s1 = smov 56  }
   0x5   :  { %117 = vmatpush.msra.mxu1 %v783_v2  ;;  %180 = vmatpush.msra.mxu2 %v783_v2  ;;  %vm22_vm3 = vcmask 64512   ;;  %v635_v13 = vld [vmem:[%s953_s0 + $0x2] sm:$0x3]  ;;  %v739_v14 = vmov 0.0   ;;  %s740_s28 = smov 48   ;;  %s741_s29 = smov 80  }
   0x6   :  { %55 = vmatpush.msra.mxu0 %v788_v3  ;;  %234 = vmatpush.msra.mxu3 %v783_v2  ;;  %v23_v15 = vsel %vm22_vm3, 1.0, %v739_v14  ;;  %vm24_vm4 = vcmask 130048   ;;  %v638_v40 = vld [vmem:[%s953_s0 + $0x4] sm:$0x3]  ;;  %v641_v60 = vld [vmem:[%s953_s0 + $0x6] sm:$0x3] }
   0x7   :  { %118 = vmatpush.msra.mxu1 %v788_v3  ;;  %181 = vmatpush.msra.mxu2 %v788_v3  ;;  %v25_v33 = vsel %vm24_vm4, 1.0, %v739_v14  ;;  %s742_s22 = smov 64   ;;  %s743_s25 = smov [#allocation2]   ;;  %vm615_vm5 = vcmask 25600  }
   0x8   :  { %235 = vmatpush.msra.mxu3 %v788_v3  ;;  %56 = vmatpush.msra.mxu0 %v807_v4  ;;  %s624_s27 = sshll.u32 %s957_s4, 4  ;;  %s625_s27 = int_to_ptr.hbm [resolvable:$true] %s624_s27 }
   0x9   :  { %119 = vmatpush.msra.mxu1 %v807_v4  ;;  %182 = vmatpush.msra.mxu2 %v807_v4 }
   0xa   :  { %236 = vmatpush.msra.mxu3 %v807_v4  ;;  %645 = vmatpush.msk.msrb.mxu0 %vm37_vm0, %v775_v1 }
   0xb   :  { %648 = vmatpush.msk.msrb.mxu1 %vm37_vm0, %v775_v1  ;;  %651 = vmatpush.msk.msrb.mxu2 %vm37_vm0, %v775_v1 }
   0xc   :  { %654 = vmatpush.msk.msrb.mxu3 %vm37_vm0, %v775_v1  ;;  %288 = vmatpush.msrb.mxu0 %v783_v2 }
   0xd   :  { %342 = vmatpush.msrb.mxu1 %v783_v2  ;;  %396 = vmatpush.msrb.mxu2 %v783_v2 }
   0xe   :  { %450 = vmatpush.msrb.mxu3 %v783_v2  ;;  %289 = vmatpush.msrb.mxu0 %v788_v3 }
   0xf   :  { %343 = vmatpush.msrb.mxu1 %v788_v3  ;;  %397 = vmatpush.msrb.mxu2 %v788_v3 }
  0x10   :  { %451 = vmatpush.msrb.mxu3 %v788_v3  ;;  %290 = vmatpush.msrb.mxu0 %v807_v4 }
  0x11   :  { %344 = vmatpush.msrb.mxu1 %v807_v4  ;;  %398 = vmatpush.msrb.mxu2 %v807_v4 }
  0x12   :  { %452 = vmatpush.msrb.mxu3 %v807_v4  ;;  %82 = vrot.lane.b32.xlu2 %v23_v15, %s740_s28 }
  0x6c   :  { %v83_v21 = vpop.permute.xlu2 %82 }
  0x74   :  { %v29_v5 = vpop.permute.xlu0 %28 }
  0x75   :  { %v32_v6 = vsel %vm31_vm1, 0.0, %v29_v5 }
  0x76   :  { %634 = vmatmul.msk.f32.vlgmr.msra.gmra.mxu0 %vm33_vm2, %v32_v6 }
  0x77   :  { %657 = vmatpush.msk.msra.mxu0 %vm37_vm0, %v775_v1 }
  0x79   :  { %504 = vmatpush.msra.mxu0 %v783_v2 }
  0x7b   :  { %505 = vmatpush.msra.mxu0 %v788_v3 }
  0x7d   :  { %506 = vmatpush.msra.mxu0 %v807_v4 }
  0xf3   :  { %v58_v7 = vpop.f32.mrf.mxu0 }
  0xf4   :  { %671 = vtanh.f32 %v58_v7 }
  0xfa   :  { %v672_v8 = vpop.eup %671 }
  0xfb   :  { %66 = vrot.lane.b32.xlu0 %v672_v8, %s738_s1  ;;  %v62_v9 = vmul.f32 0.5, %v672_v8  ;;  %v644_v8 = vld [vmem:[%s953_s0 + $0x8] sm:$0x3] }
  0xfd   :  { %v63_v10 = vadd.f32 0.5, %v62_v9 }
  0xff   :  { %v64_v16 = vmul.f32 0.0, %v63_v10 }
 0x103   :  { %97 = vrot.lane.b32.xlu0 %v635_v13, %s737_s19 }
 0x16d   :  { %v67_v11 = vpop.permute.xlu0 %66 }
 0x16e   :  { %v69_v12 = vmul.f32 %v67_v11, %v63_v10 }
 0x170   :  { %71 = vrot.lane.b32.xlu1 %v69_v12, %s737_s19 }
 0x175   :  { %v98_v24 = vpop.permute.xlu0 %97 }
 0x1e2   :  { %v72_v17 = vpop.permute.xlu1 %71 }
 0x1e3   :  { %v74_v18 = vadd.f32 %v72_v17, %v64_v16 }
 0x1e5   :  { %673 = vtanh.f32 %v74_v18 }
 0x1eb   :  { %v674_v19 = vpop.eup %673 }
 0x1ec   :  { %77 = vrot.lane.b32.xlu1 %v674_v19, %s737_s19 }
 0x25e   :  { %v78_v20 = vpop.permute.xlu1 %77 }
 0x25f   :  { %v80_v22 = vmul.f32 %v78_v20, %v63_v10 }
 0x261   :  { %v85_v23 = vmul.f32 %v83_v21, %v80_v22 }
 0x263   :  { %93 = vrot.lane.b32.xlu2 %v85_v23, %s741_s29 }
 0x26b   :  { %86 = vrot.lane.b32.xlu2 %v23_v15, %s737_s19 }
 0x273   :  { %145 = vrot.lane.b32.xlu2 %v25_v33, %s740_s28 }
 0x2bd   :  { %v94_v25 = vpop.permute.xlu2 %93 }
 0x2be   :  { %v100_v26 = vsel %vm31_vm1, %v94_v25, %v98_v24 }
 0x2bf   :  { %637 = vmatmul.msk.f32.vlgmr.msra.gmra.mxu1 %vm33_vm2, %v100_v26 }
 0x2c0   :  { %660 = vmatpush.msk.msra.mxu1 %vm37_vm0, %v775_v1 }
 0x2c2   :  { %558 = vmatpush.msra.mxu1 %v783_v2 }
 0x2c4   :  { %559 = vmatpush.msra.mxu1 %v788_v3 }
 0x2c5   :  { %v87_v34 = vpop.permute.xlu2 %86 }
 0x2c6   :  { %560 = vmatpush.msra.mxu1 %v807_v4  ;;  %v89_v35 = vmul.f32 %v87_v34, %v74_v18 }
 0x2cd   :  { %v146_v42 = vpop.permute.xlu2 %145 }
 0x33c   :  { %v121_v27 = vpop.f32.mrf.mxu1 }
 0x33d   :  { %675 = vtanh.f32 %v121_v27 }
 0x343   :  { %v676_v28 = vpop.eup %675 }
 0x344   :  { %129 = vrot.lane.b32.xlu1 %v676_v28, %s738_s1  ;;  %v125_v29 = vmul.f32 0.5, %v676_v28  ;;  %v647_v28 = vld [vmem:[%s953_s0 + $0xa] sm:$0x3] }
 0x346   :  { %v126_v30 = vadd.f32 0.5, %v125_v29 }
 0x348   :  { %v127_v36 = vmul.f32 %v126_v30, %v89_v35 }
 0x3b6   :  { %v130_v31 = vpop.permute.xlu1 %129 }
 0x3b7   :  { %v132_v32 = vmul.f32 %v130_v31, %v126_v30 }
 0x3b9   :  { %134 = vrot.lane.b32.xlu0 %v132_v32, %s737_s19 }
 0x42b   :  { %v135_v37 = vpop.permute.xlu0 %134 }
 0x42c   :  { %v137_v38 = vadd.f32 %v135_v37, %v127_v36 }
 0x42e   :  { %677 = vtanh.f32 %v137_v38 }
 0x434   :  { %v678_v39 = vpop.eup %677 }
 0x435   :  { %140 = vrot.lane.b32.xlu1 %v678_v39, %s737_s19 }
 0x43d   :  { %160 = vrot.lane.b32.xlu1 %v638_v40, %s737_s19 }
 0x4a7   :  { %v141_v41 = vpop.permute.xlu1 %140 }
 0x4a8   :  { %v143_v43 = vmul.f32 %v141_v41, %v126_v30 }
 0x4aa   :  { %v148_v44 = vmul.f32 %v146_v42, %v143_v43 }
 0x4ac   :  { %156 = vrot.lane.b32.xlu0 %v148_v44, %s741_s29  ;;  %v650_v44 = vld [vmem:[%s953_s0 + $0xc] sm:$0x3] }
 0x4af   :  { %v161_v45 = vpop.permute.xlu1 %160 }
 0x4b4   :  { %149 = vrot.lane.b32.xlu0 %v25_v33, %s737_s19 }
 0x51e   :  { %v157_v46 = vpop.permute.xlu0 %156 }
 0x51f   :  { %v163_v47 = vsel %vm31_vm1, %v157_v46, %v161_v45 }
 0x520   :  { %640 = vmatmul.msk.f32.vlgmr.msra.gmra.mxu2 %vm33_vm2, %v163_v47 }
 0x526   :  { %v150_v54 = vpop.permute.xlu0 %149 }
 0x527   :  { %v152_v55 = vmul.f32 %v150_v54, %v137_v38 }
 0x5a3   :  { %v184_v48 = vpop.f32.mrf.mxu2 }
 0x5a4   :  { %679 = vtanh.f32 %v184_v48 }
 0x5aa   :  { %v680_v49 = vpop.eup %679 }
 0x5ab   :  { %192 = vrot.lane.b32.xlu2 %v680_v49, %s738_s1  ;;  %v188_v50 = vmul.f32 0.5, %v680_v49 }
 0x5ad   :  { %v189_v51 = vadd.f32 0.5, %v188_v50 }
 0x5af   :  { %v190_v56 = vmul.f32 %v189_v51, %v152_v55 }
 0x605   :  { %v193_v52 = vpop.permute.xlu2 %192 }
 0x606   :  { %v195_v53 = vmul.f32 %v193_v52, %v189_v51 }
 0x608   :  { %197 = vrot.lane.b32.xlu1 %v195_v53, %s737_s19 }
 0x610   :  { %214 = vrot.lane.b32.xlu1 %v641_v60, %s737_s19 }
 0x67a   :  { %v198_v57 = vpop.permute.xlu1 %197 }
 0x67b   :  { %v200_v58 = vadd.f32 %v198_v57, %v190_v56  ;;  %v653_v56 = vld [vmem:[%s953_s0 + $0xe] sm:$0x3] }
 0x67d   :  { %681 = vtanh.f32 %v200_v58 }
 0x682   :  { %v215_v63 = vpop.permute.xlu1 %214 }
 0x683   :  { %v682_v59 = vpop.eup %681 }
 0x684   :  { %203 = vrot.lane.b32.xlu2 %v682_v59, %s737_s19 }
 0x6de   :  { %v204_v61 = vpop.permute.xlu2 %203 }
 0x6df   :  { %v206_v62 = vmul.f32 %v204_v61, %v189_v51 }
 0x6e1   :  { %210 = vrot.lane.b32.xlu0 %v206_v62, %s741_s29 }
 0x753   :  { %v211_v0 = vpop.permute.xlu0 %210 }
 0x754   :  { %v217_v1 = vsel %vm31_vm1, %v211_v0, %v215_v63 }
 0x755   :  { %643 = vmatmul.msk.f32.vlgmr.msra.gmra.mxu3 %vm33_vm2, %v217_v1 }
 0x7d8   :  { %v238_v2 = vpop.f32.mrf.mxu3 }
 0x7d9   :  { %683 = vtanh.f32 %v238_v2 }
 0x7df   :  { %v684_v3 = vpop.eup %683 }
 0x7e0   :  { %246 = vrot.lane.b32.xlu2 %v684_v3, %s738_s1  ;;  %v242_v4 = vmul.f32 0.5, %v684_v3 }
 0x7e2   :  { %v243_v5 = vadd.f32 0.5, %v242_v4 }
 0x7e4   :  { %v244_v9 = vmul.f32 %v243_v5, %v200_v58 }
 0x83a   :  { %v247_v6 = vpop.permute.xlu2 %246 }
 0x83b   :  { %v249_v7 = vmul.f32 %v247_v6, %v243_v5 }
 0x83d   :  { %251 = vrot.lane.b32.xlu0 %v249_v7, %s737_s19 }
 0x845   :  { %268 = vrot.lane.b32.xlu0 %v644_v8, %s737_s19 }
 0x8af   :  { %v252_v10 = vpop.permute.xlu0 %251 }
 0x8b0   :  { %v254_v11 = vadd.f32 %v252_v10, %v244_v9 }
 0x8b2   :  { %685 = vtanh.f32 %v254_v11 }
 0x8b7   :  { %v269_v15 = vpop.permute.xlu0 %268 }
 0x8b8   :  { %v686_v12 = vpop.eup %685 }
 0x8b9   :  { %257 = vrot.lane.b32.xlu1 %v686_v12, %s737_s19  ;;  %v656_v12 = vld [vmem:[%s953_s0 + $0x10] sm:$0x3] }
 0x92b   :  { %v258_v13 = vpop.permute.xlu1 %257 }
 0x92c   :  { %v260_v14 = vmul.f32 %v258_v13, %v243_v5 }
 0x92e   :  { %264 = vrot.lane.b32.xlu2 %v260_v14, %s741_s29 }
 0x988   :  { %v265_v16 = vpop.permute.xlu2 %264 }
 0x989   :  { %v271_v17 = vsel %vm31_vm1, %v265_v16, %v269_v15 }
 0x98a   :  { %646 = vmatmul.msk.f32.vlgmr.msrb.gmra.mxu0 %vm33_vm2, %v271_v17 }
 0xa07   :  { %v292_v18 = vpop.f32.mrf.mxu0 }
 0xa08   :  { %687 = vtanh.f32 %v292_v18 }
 0xa0e   :  { %v688_v19 = vpop.eup %687 }
 0xa0f   :  { %300 = vrot.lane.b32.xlu1 %v688_v19, %s738_s1  ;;  %v296_v20 = vmul.f32 0.5, %v688_v19 }
 0xa11   :  { %v297_v21 = vadd.f32 0.5, %v296_v20 }
 0xa13   :  { %v298_v24 = vmul.f32 %v297_v21, %v254_v11 }
 0xa81   :  { %v301_v22 = vpop.permute.xlu1 %300 }
 0xa82   :  { %v303_v23 = vmul.f32 %v301_v22, %v297_v21 }
 0xa84   :  { %305 = vrot.lane.b32.xlu2 %v303_v23, %s737_s19 }
 0xa8c   :  { %322 = vrot.lane.b32.xlu2 %v647_v28, %s737_s19  ;;  %v659_v28 = vld [vmem:[%s953_s0 + $0x12] sm:$0x3] }
 0xade   :  { %v306_v25 = vpop.permute.xlu2 %305 }
 0xadf   :  { %v308_v26 = vadd.f32 %v306_v25, %v298_v24 }
 0xae1   :  { %689 = vtanh.f32 %v308_v26 }
 0xae6   :  { %v323_v31 = vpop.permute.xlu2 %322 }
 0xae7   :  { %v690_v27 = vpop.eup %689 }
 0xae8   :  { %311 = vrot.lane.b32.xlu0 %v690_v27, %s737_s19 }
 0xb5a   :  { %v312_v29 = vpop.permute.xlu0 %311 }
 0xb5b   :  { %v314_v30 = vmul.f32 %v312_v29, %v297_v21 }
 0xb5d   :  { %318 = vrot.lane.b32.xlu1 %v314_v30, %s741_s29 }
 0xbcf   :  { %v319_v32 = vpop.permute.xlu1 %318 }
 0xbd0   :  { %v325_v33 = vsel %vm31_vm1, %v319_v32, %v323_v31 }
 0xbd1   :  { %649 = vmatmul.msk.f32.vlgmr.msrb.gmra.mxu1 %vm33_vm2, %v325_v33 }
 0xc4e   :  { %v346_v34 = vpop.f32.mrf.mxu1 }
 0xc4f   :  { %691 = vtanh.f32 %v346_v34 }
 0xc55   :  { %v692_v35 = vpop.eup %691 }
 0xc56   :  { %354 = vrot.lane.b32.xlu0 %v692_v35, %s738_s1  ;;  %v350_v36 = vmul.f32 0.5, %v692_v35 }
 0xc58   :  { %v351_v37 = vadd.f32 0.5, %v350_v36 }
 0xc5a   :  { %v352_v40 = vmul.f32 %v351_v37, %v308_v26 }
 0xcc8   :  { %v355_v38 = vpop.permute.xlu0 %354 }
 0xcc9   :  { %v357_v39 = vmul.f32 %v355_v38, %v351_v37 }
 0xccb   :  { %359 = vrot.lane.b32.xlu1 %v357_v39, %s737_s19 }
 0xcd3   :  { %376 = vrot.lane.b32.xlu1 %v650_v44, %s737_s19  ;;  %v585_v44 = vld [vmem:[%s955_s2] sm:$0xff] }
 0xcd4   :  { %610 = vmatpush.msra.mxu2 %v585_v44 }
 0xd3d   :  { %v360_v41 = vpop.permute.xlu1 %359 }
 0xd3e   :  { %v362_v42 = vadd.f32 %v360_v41, %v352_v40 }
 0xd40   :  { %693 = vtanh.f32 %v362_v42 }
 0xd45   :  { %v377_v47 = vpop.permute.xlu1 %376 }
 0xd46   :  { %v694_v43 = vpop.eup %693 }
 0xd47   :  { %365 = vrot.lane.b32.xlu2 %v694_v43, %s737_s19 }
 0xda1   :  { %v366_v45 = vpop.permute.xlu2 %365 }
 0xda2   :  { %v368_v46 = vmul.f32 %v366_v45, %v351_v37 }
 0xda4   :  { %372 = vrot.lane.b32.xlu0 %v368_v46, %s741_s29 }
 0xe16   :  { %v373_v48 = vpop.permute.xlu0 %372 }
 0xe17   :  { %v379_v49 = vsel %vm31_vm1, %v373_v48, %v377_v47  ;;  %v670_v48 = vld [vmem:[%s956_s3] ss:$0 sm:$0xff] }
 0xe18   :  { %652 = vmatmul.msk.f32.vlgmr.msrb.gmra.mxu2 %vm33_vm2, %v379_v49 }
 0xe9b   :  { %v400_v50 = vpop.f32.mrf.mxu2 }
 0xe9c   :  { %695 = vtanh.f32 %v400_v50 }
 0xea2   :  { %v696_v51 = vpop.eup %695 }
 0xea3   :  { %408 = vrot.lane.b32.xlu2 %v696_v51, %s738_s1  ;;  %v404_v52 = vmul.f32 0.5, %v696_v51 }
 0xea5   :  { %v405_v53 = vadd.f32 0.5, %v404_v52 }
 0xea7   :  { %v406_v57 = vmul.f32 %v405_v53, %v362_v42 }
 0xefd   :  { %v409_v54 = vpop.permute.xlu2 %408 }
 0xefe   :  { %v411_v55 = vmul.f32 %v409_v54, %v405_v53 }
 0xf00   :  { %413 = vrot.lane.b32.xlu0 %v411_v55, %s737_s19 }
 0xf08   :  { %430 = vrot.lane.b32.xlu0 %v653_v56, %s737_s19 }
 0xf72   :  { %v414_v58 = vpop.permute.xlu0 %413 }
 0xf73   :  { %v416_v59 = vadd.f32 %v414_v58, %v406_v57 }
 0xf75   :  { %697 = vtanh.f32 %v416_v59 }
 0xf7a   :  { %v431_v63 = vpop.permute.xlu0 %430 }
 0xf7b   :  { %v698_v60 = vpop.eup %697 }
 0xf7c   :  { %419 = vrot.lane.b32.xlu1 %v698_v60, %s737_s19 }
 0xfee   :  { %v420_v61 = vpop.permute.xlu1 %419 }
 0xfef   :  { %v422_v62 = vmul.f32 %v420_v61, %v405_v53 }
 0xff1   :  { %426 = vrot.lane.b32.xlu2 %v422_v62, %s741_s29 }
0x104b   :  { %v427_v0 = vpop.permute.xlu2 %426 }
0x104c   :  { %v433_v1 = vsel %vm31_vm1, %v427_v0, %v431_v63 }
0x104d   :  { %655 = vmatmul.msk.f32.vlgmr.msrb.gmra.mxu3 %vm33_vm2, %v433_v1 }
0x10d0   :  { %v454_v2 = vpop.f32.mrf.mxu3 }
0x10d1   :  { %699 = vtanh.f32 %v454_v2 }
0x10d7   :  { %v700_v3 = vpop.eup %699 }
0x10d8   :  { %462 = vrot.lane.b32.xlu1 %v700_v3, %s738_s1  ;;  %v458_v4 = vmul.f32 0.5, %v700_v3 }
0x10da   :  { %v459_v5 = vadd.f32 0.5, %v458_v4 }
0x10dc   :  { %v460_v8 = vmul.f32 %v459_v5, %v416_v59 }
0x114a   :  { %v463_v6 = vpop.permute.xlu1 %462 }
0x114b   :  { %v465_v7 = vmul.f32 %v463_v6, %v459_v5 }
0x114d   :  { %467 = vrot.lane.b32.xlu2 %v465_v7, %s737_s19 }
0x1155   :  { %484 = vrot.lane.b32.xlu2 %v656_v12, %s737_s19 }
0x11a7   :  { %v468_v9 = vpop.permute.xlu2 %467 }
0x11a8   :  { %v470_v10 = vadd.f32 %v468_v9, %v460_v8 }
0x11aa   :  { %701 = vtanh.f32 %v470_v10 }
0x11af   :  { %v485_v15 = vpop.permute.xlu2 %484 }
0x11b0   :  { %v702_v11 = vpop.eup %701 }
0x11b1   :  { %473 = vrot.lane.b32.xlu0 %v702_v11, %s737_s19 }
0x1223   :  { %v474_v13 = vpop.permute.xlu0 %473 }
0x1224   :  { %v476_v14 = vmul.f32 %v474_v13, %v459_v5 }
0x1226   :  { %480 = vrot.lane.b32.xlu1 %v476_v14, %s741_s29 }
0x1298   :  { %v481_v16 = vpop.permute.xlu1 %480 }
0x1299   :  { %v487_v17 = vsel %vm31_vm1, %v481_v16, %v485_v15 }
0x129a   :  { %658 = vmatmul.msk.f32.vlgmr.msra.gmra.mxu0 %vm33_vm2, %v487_v17 }
0x1317   :  { %v508_v18 = vpop.f32.mrf.mxu0 }
0x1318   :  { %703 = vtanh.f32 %v508_v18 }
0x131e   :  { %v704_v19 = vpop.eup %703 }
0x131f   :  { %516 = vrot.lane.b32.xlu0 %v704_v19, %s738_s1  ;;  %v512_v20 = vmul.f32 0.5, %v704_v19 }
0x1321   :  { %v513_v21 = vadd.f32 0.5, %v512_v20 }
0x1323   :  { %v514_v24 = vmul.f32 %v513_v21, %v470_v10 }
0x1391   :  { %v517_v22 = vpop.permute.xlu0 %516 }
0x1392   :  { %v519_v23 = vmul.f32 %v517_v22, %v513_v21 }
0x1394   :  { %521 = vrot.lane.b32.xlu1 %v519_v23, %s737_s19 }
0x139c   :  { %538 = vrot.lane.b32.xlu1 %v659_v28, %s737_s19 }
0x1406   :  { %v522_v25 = vpop.permute.xlu1 %521 }
0x1407   :  { %v524_v26 = vadd.f32 %v522_v25, %v514_v24 }
0x1409   :  { %705 = vtanh.f32 %v524_v26 }
0x140e   :  { %v539_v31 = vpop.permute.xlu1 %538 }
0x140f   :  { %v706_v27 = vpop.eup %705 }
0x1410   :  { %527 = vrot.lane.b32.xlu2 %v706_v27, %s737_s19 }
0x146a   :  { %v528_v29 = vpop.permute.xlu2 %527 }
0x146b   :  { %v530_v30 = vmul.f32 %v528_v29, %v513_v21 }
0x146d   :  { %534 = vrot.lane.b32.xlu0 %v530_v30, %s741_s29 }
0x14df   :  { %v535_v32 = vpop.permute.xlu0 %534 }
0x14e0   :  { %v541_v33 = vsel %vm31_vm1, %v535_v32, %v539_v31 }
0x14e1   :  { %661 = vmatmul.msk.f32.vlgmr.msra.gmra.mxu1 %vm33_vm2, %v541_v33 }
0x155e   :  { %v562_v34 = vpop.f32.mrf.mxu1 }
0x155f   :  { %707 = vtanh.f32 %v562_v34 }
0x1565   :  { %v708_v35 = vpop.eup %707 }
0x1566   :  { %570 = vrot.lane.b32.xlu2 %v708_v35, %s738_s1  ;;  %v566_v36 = vmul.f32 0.5, %v708_v35  ;;  %s622_s1 = sshll.u32 %s743_s25, 4  ;;  %s623_s1 = int_to_ptr.vmem [resolvable:$true] %s622_s1 }
0x1568   :  { %v567_v37 = vadd.f32 0.5, %v566_v36 }
0x156a   :  { %v568_v40 = vmul.f32 %v567_v37, %v524_v26 }
0x15c0   :  { %v571_v38 = vpop.permute.xlu2 %570 }
0x15c1   :  { %v573_v39 = vmul.f32 %v571_v38, %v567_v37 }
0x15c3   :  { %575 = vrot.lane.b32.xlu0 %v573_v39, %s737_s19 }
0x1635   :  { %v576_v41 = vpop.permute.xlu0 %575 }
0x1636   :  { %v578_v42 = vadd.f32 %v576_v41, %v568_v40 }
0x1638   :  { %709 = vtanh.f32 %v578_v42 }
0x163e   :  { %v710_v43 = vpop.eup %709 }
0x163f   :  { %581 = vrot.lane.b32.xlu1 %v710_v43, %s737_s19 }
0x16b1   :  { %v582_v45 = vpop.permute.xlu1 %581 }
0x16b2   :  { %v584_v46 = vmul.f32 %v582_v45, %v567_v37 }
0x16b4   :  { %591 = vrot.lane.b32.xlu2 %v584_v46, %s742_s22 }
0x170e   :  { %v592_v47 = vpop.permute.xlu2 %591 }
0x170f   :  { %662 = vmatmul.msk.f32.vlgmr.msra.gmra.mxu2 %vm22_vm3, %v592_v47 }
0x1792   :  { %v612_v49 = vpop.f32.mrf.mxu2 }
0x1793   :  { %v613_v50 = vadd.f32 %v670_v48, %v612_v49 }
0x1795   :  { %616 = vst.msk [vmem:[#allocation2] sm:$0x3] %vm615_vm5, %v613_v50 }
0x1796   :  { %627 = dma.vmem_to_hbm [thread:$0]  %s623_s1, 32, %s625_s27, [#allocation3]  }
0x1797   :  { %735 = dma.done.wait [#allocation3], 32  }
0x1798   :  { %736 = vsyncadd [#allocation3], 4294967264 }
0x1799   :  { %632 = vsyncpa [#allocation3], 1 }

</bundles_post_ra>
